<compile_context>
chip_gen: v6e
topology: v6e:2x2x1
jax: 0.10.0
libtpu: 0.0.40
codegen_flags: <defaults>
</compile_context>

<pallas_src>
import functools

import jax
import jax.numpy as jnp
from jax import lax
from jax.experimental import pallas as pl
from jax.experimental.pallas import tpu as pltpu


def _round_up(x, m):
    return (x + m - 1) // m * m


# ------------------------------ fused WordRep kernel ------------------------------
def _wordrep_kernel(word_ids_ref, *refs, num_feat, rate, training):
    """Fused WordRep forward for one tile of T rows (words).

    Refs (after the scalar-prefetched word ids, which live in SMEM):
      ids_ref      : (T, F+L) int32 -- per row: F feature ids then L char ids
                     (char ids already permuted by char_seq_recover).
      rand_ref     : (T, L*CD + total) uint8 dropout thresholds (training only).
      word_hbm     : (Vw, WD) f32 word table, left in HBM (pl.ANY).
      feat_tabs[f] : (Vf, Df) f32, VMEM-resident.
      char_tab     : (CV, CD) f32, VMEM-resident.
      w_ref        : (3*CD, CH) f32 conv weight, the 3 taps stacked along rows.
      b_ref        : (1, CH)  f32 conv bias.
      o_ref        : (T, total) f32 output tile.
      wbuf         : (T, WD) f32 VMEM scratch for the gathered word rows.
      sem          : (1,) DMA semaphore.
    """
    if training:
        ids_ref, rand_ref = refs[0], refs[1]
        rest = refs[2:]
    else:
        ids_ref, rand_ref = refs[0], None
        rest = refs[1:]
    word_hbm = rest[0]
    feat_tabs = rest[1:1 + num_feat]
    char_tab_ref = rest[1 + num_feat]
    w_ref = rest[2 + num_feat]
    b_ref = rest[3 + num_feat]
    o_ref = rest[4 + num_feat]
    wbuf = rest[5 + num_feat]
    sem = rest[6 + num_feat]

    T, ncols = ids_ref.shape
    F = num_feat
    L = ncols - F
    CV, CD = char_tab_ref.shape

    base = pl.program_id(0) * T

    # ---- batched word-row gather: issue T row DMAs now, wait after the compute ----
    @pl.loop(0, T)
    def _issue(t):
        row = word_ids_ref[base + t]
        pltpu.make_async_copy(word_hbm.at[pl.ds(row, 1), :],
                              wbuf.at[pl.ds(t, 1), :],
                              sem.at[0]).start()

    ids = ids_ref[...]                                        # (T, F+L) int32

    if training:
        rand_i = rand_ref[...].astype(jnp.int32)              # one unpack, reused
        thresh = int(round(rate * 256.0))
        scale = 1.0 / (1.0 - rate)

    # ---- feature embeddings: one-hot MXU lookup from VMEM-resident tables ----
    feat_tiles = []
    for f in range(F):
        Vf = feat_tabs[f].shape[0]
        onehot = (lax.broadcasted_iota(jnp.int32, (T, Vf), 1)
                  == ids[:, f:f + 1]).astype(jnp.float32)
        feat_tiles.append(jnp.dot(onehot, feat_tabs[f][...],
                                  preferred_element_type=jnp.float32))

    # ---- CharCNN: one-hot embed -> dropout -> conv1d(k=3,p=1) -> streamed max-pool ----
    char_tab = char_tab_ref[...]
    char_iota = lax.broadcasted_iota(jnp.int32, (T, CV), 1)   # hoisted, reused L+ times
    w_flat = w_ref[...]                                       # (3*CD, CH)

    def embed_char(l):
        onehot = (char_iota == ids[:, F + l:F + l + 1]).astype(jnp.float32)
        x = jnp.dot(onehot, char_tab, preferred_element_type=jnp.float32)   # (T, CD)
        if training:                                          # fused char dropout
            keep = rand_i[:, l * CD:(l + 1) * CD] >= thresh
            x = jnp.where(keep, x * scale, 0.0)
        return x

    zeros_cd = jnp.zeros((T, CD), jnp.float32)
    x_prev = zeros_cd                                         # left zero pad
    x_cur = embed_char(0)
    pooled = None
    for l in range(L):
        x_next = embed_char(l + 1) if l + 1 < L else zeros_cd  # right zero pad
        slab = jnp.concatenate([x_prev, x_cur, x_next], axis=1)       # (T, 3*CD)
        y = jnp.dot(slab, w_flat, preferred_element_type=jnp.float32)  # (T, CH)
        pooled = y if pooled is None else jnp.maximum(pooled, y)       # streamed max
        x_prev, x_cur = x_cur, x_next
    char_feat = pooled + b_ref[...]          # bias is position-invariant -> post-pool

    # ---- wait for the gathered word rows (latency hidden behind the char compute) ----
    @pl.loop(0, T)
    def _wait(t):
        pltpu.make_async_copy(word_hbm.at[pl.ds(0, 1), :],
                              wbuf.at[pl.ds(0, 1), :],
                              sem.at[0]).wait()

    # ---- assemble in registers, fused output dropout, single full-width store ----
    out_tile = jnp.concatenate([wbuf[...]] + feat_tiles + [char_feat], axis=1)
    if training:
        keep = rand_i[:, L * CD:] >= thresh
        out_tile = jnp.where(keep, out_tile * scale, 0.0)
    o_ref[...] = out_tile


# ------------------------------ WordRep module --------------------------------
def init_wordrep_params(key, word_vocab, word_dim, feat_vocabs, feat_dims,
                        char_vocab, char_dim, char_hidden):
    def rand_emb(k, vocab, dim):
        scale = (3.0 / dim) ** 0.5                 # random_embedding() semantics
        return jax.random.uniform(k, (vocab, dim), jnp.float32, -scale, scale)

    keys = jax.random.split(key, 3 + len(feat_vocabs))
    params = {
        "word_emb": rand_emb(keys[0], word_vocab, word_dim),
        "char_emb": rand_emb(keys[1], char_vocab, char_dim),
        "feat_embs": [rand_emb(keys[3 + i], v, d)
                      for i, (v, d) in enumerate(zip(feat_vocabs, feat_dims))],
    }
    # Conv1d(char_dim, char_hidden, kernel_size=3, padding=1) default-style init
    fan_in = char_dim * 3
    bound = (1.0 / fan_in) ** 0.5
    k_w, k_b = jax.random.split(keys[2])
    params["char_cnn_w"] = jax.random.uniform(k_w, (3, char_dim, char_hidden),
                                              jnp.float32, -bound, bound)
    params["char_cnn_b"] = jax.random.uniform(k_b, (char_hidden,),
                                              jnp.float32, -bound, bound)
    return params


def wordrep_forward(params, word_inputs, feature_inputs, char_inputs, char_seq_recover,
                    dropout_rate=0.5, training=False, rng_key=None, tile_words=256):
    B, S = word_inputs.shape
    n_words, L = char_inputs.shape                 # n_words == B * S
    N = B * S
    WD = params["word_emb"].shape[1]
    CV, CD = params["char_emb"].shape
    CH = params["char_cnn_w"].shape[-1]
    F = len(params["feat_embs"])
    feat_dims = [t.shape[1] for t in params["feat_embs"]]
    total = WD + sum(feat_dims) + CH

    # Row tile well above 128 for realistic N (mem-bound roofline); the tiny demo
    # runs as a single full-size tile.  Only int id / uint8 rand arrays get padded.
    T = min(tile_words, _round_up(N, 8))
    N_pad = _round_up(N, T)
    pad = N_pad - N

    word_ids = jnp.pad(word_inputs.reshape(-1).astype(jnp.int32), (0, pad))

    # char_seq_recover is folded in on the tiny int ids, so the float char features
    # come out of the kernel already in (batch, sent) order.
    char_ordered = char_inputs[char_seq_recover].astype(jnp.int32)        # (N, L)
    id_cols = [f.reshape(-1, 1).astype(jnp.int32) for f in feature_inputs]
    ids = jnp.concatenate(id_cols + [char_ordered], axis=1)               # (N, F+L)
    ids = jnp.pad(ids, ((0, pad), (0, 0)))

    use_dropout = bool(training) and dropout_rate > 0.0
    inputs = [word_ids, ids]
    in_specs = [pl.BlockSpec((T, F + L), lambda i, *_: (i, 0))]
    if use_dropout:
        # External uint8 thresholds (in-kernel pltpu.prng_* failed to lower in an
        # earlier check); 4x less HBM traffic than f32 uniforms, mask+scale fused.
        if rng_key is None:
            rng_key = jax.random.PRNGKey(0)
        rw = L * CD + total
        rand_u8 = jax.random.bits(rng_key, (N_pad, rw), jnp.uint8)
        inputs.append(rand_u8)
        in_specs.append(pl.BlockSpec((T, rw), lambda i, *_: (i, 0)))

    # Word table stays in HBM (vocab can be huge); small tables are VMEM-resident.
    inputs.append(params["word_emb"])
    in_specs.append(pl.BlockSpec(memory_space=pl.ANY))
    for tab in params["feat_embs"]:
        inputs.append(tab)
        in_specs.append(pl.BlockSpec(tab.shape, lambda i, *_: (0, 0)))
    inputs.append(params["char_emb"])
    in_specs.append(pl.BlockSpec((CV, CD), lambda i, *_: (0, 0)))
    w_flat = params["char_cnn_w"].reshape(3 * CD, CH)   # taps stacked along rows
    b2 = params["char_cnn_b"].reshape(1, CH)
    inputs += [w_flat, b2]
    in_specs += [pl.BlockSpec((3 * CD, CH), lambda i, *_: (0, 0)),
                 pl.BlockSpec((1, CH), lambda i, *_: (0, 0))]

    kernel = functools.partial(_wordrep_kernel, num_feat=F,
                               rate=float(dropout_rate), training=use_dropout)

    out = pl.pallas_call(
        kernel,
        out_shape=jax.ShapeDtypeStruct((N_pad, total), jnp.float32),
        grid_spec=pltpu.PrefetchScalarGridSpec(
            num_scalar_prefetch=1,
            grid=(N_pad // T,),
            in_specs=in_specs,
            out_specs=pl.BlockSpec((T, total), lambda i, *_: (i, 0)),
            scratch_shapes=[pltpu.VMEM((T, WD), jnp.float32),
                            pltpu.SemaphoreType.DMA((1,))]),
        compiler_params=pltpu.CompilerParams(
            dimension_semantics=("parallel",),
            vmem_limit_bytes=32 * 1024 * 1024),
    )(*inputs)

    # TODO(synk): sw_num ContextualLSTM branch omitted (class not in reference source).
    return out[:N].reshape(B, S, total)


def wordrep_reference_eval(params, word_inputs, feature_inputs, char_inputs,
                           char_seq_recover):
    """Pure-JAX reference (eval mode, no dropout) for the correctness check."""
    B, S = word_inputs.shape
    n_words, L = char_inputs.shape
    word_e = params["word_emb"][word_inputs]
    feats = [tab[feature_inputs[i]] for i, tab in enumerate(params["feat_embs"])]
    ce = params["char_emb"][char_inputs]
    xp = jnp.pad(ce, ((0, 0), (1, 1), (0, 0)))
    w, b = params["char_cnn_w"], params["char_cnn_b"]
    conv = sum(jnp.einsum("nlc,co->nlo", xp[:, k:k + L, :], w[k]) for k in range(3)) + b
    cf = conv.max(axis=1)[char_seq_recover].reshape(B, S, -1)
    return jnp.concatenate([word_e] + feats + [cf], axis=2)


if __name__ == "__main__":
    key = jax.random.PRNGKey(0)
    B, S, L = 2, 8, 8
    WORD_VOCAB, WORD_DIM = 30, 32
    FEAT_VOCABS, FEAT_DIMS = [10], [8]
    CHAR_VOCAB, CHAR_DIM, CHAR_HID = 20, 16, 16
    DROPOUT = 0.5

    k_param, k_w, k_f, k_c, k_r, k_d = jax.random.split(key, 6)
    params = init_wordrep_params(k_param, WORD_VOCAB, WORD_DIM, FEAT_VOCABS, FEAT_DIMS,
                                 CHAR_VOCAB, CHAR_DIM, CHAR_HID)

    word_inputs = jax.random.randint(k_w, (B, S), 1, WORD_VOCAB, dtype=jnp.int32)
    feature_inputs = [jax.random.randint(k_f, (B, S), 1, FEAT_VOCABS[0], dtype=jnp.int32)]
    char_inputs = jax.random.randint(k_c, (B * S, L), 1, CHAR_VOCAB, dtype=jnp.int32)
    char_seq_recover = jax.random.permutation(k_r, B * S).astype(jnp.int32)

    # Eval-mode run (dropout = identity) + correctness check vs pure-JAX reference.
    out_eval = wordrep_forward(params, word_inputs, feature_inputs, char_inputs,
                               char_seq_recover, dropout_rate=DROPOUT, training=False)
    out_eval = jax.block_until_ready(out_eval)
    ref = wordrep_reference_eval(params, word_inputs, feature_inputs, char_inputs,
                                 char_seq_recover)
    assert out_eval.shape == (B, S, WORD_DIM + sum(FEAT_DIMS) + CHAR_HID)
    err = float(jnp.max(jnp.abs(out_eval - ref)))
    assert err < 1e-4, err

    # Training-mode run to exercise the fused dropout paths.
    out_train = wordrep_forward(params, word_inputs, feature_inputs, char_inputs,
                                char_seq_recover, dropout_rate=DROPOUT,
                                training=True, rng_key=k_d)
    jax.block_until_ready(out_train)

    print("KERNEL_OK")
</pallas_src>

<mosaic_0001>
module attributes {stable_mosaic.version = 11 : i64} {
  func.func @_wordrep_kernel(%arg0: i32, %arg1: memref<16xi32, #tpu.memory_space<smem>>, %arg2: memref<16x9xi32, #tpu.memory_space<vmem>>, %arg3: memref<30x32xf32, #tpu.memory_space<any>>, %arg4: memref<10x8xf32, #tpu.memory_space<vmem>>, %arg5: memref<20x16xf32, #tpu.memory_space<vmem>>, %arg6: memref<48x16xf32, #tpu.memory_space<vmem>>, %arg7: memref<1x16xf32, #tpu.memory_space<vmem>>, %arg8: memref<16x56xf32, #tpu.memory_space<vmem>>, %arg9: memref<16x32xf32, #tpu.memory_space<vmem>>, %arg10: memref<1x!tpu.dma_semaphore, #tpu.memory_space<semaphore_mem>>) attributes {dimension_semantics = [#tpu.dimension_semantics<parallel>], iteration_bounds = array<i64: 1>, scalar_prefetch = 1 : i64, scratch_operands = 2 : i64, tpu.core_type = #tpu.core_type<tc>, window_params = [{transform_indices = @transform_0, window_bounds = array<i64: 16, 9>}, {}, {pipeline_mode = #tpu.pipeline_mode<synchronous>, transform_indices = @transform_2, window_bounds = array<i64: 10, 8>}, {pipeline_mode = #tpu.pipeline_mode<synchronous>, transform_indices = @transform_3, window_bounds = array<i64: 20, 16>}, {pipeline_mode = #tpu.pipeline_mode<synchronous>, transform_indices = @transform_4, window_bounds = array<i64: 48, 16>}, {pipeline_mode = #tpu.pipeline_mode<synchronous>, transform_indices = @transform_5, window_bounds = array<i64: 1, 16>}, {transform_indices = @transform_6, window_bounds = array<i64: 16, 56>}]} {
    %c16_i32 = arith.constant 16 : i32
    %0 = arith.muli %arg0, %c16_i32 : i32
    %c0_i32 = arith.constant 0 : i32
    %c16_i32_0 = arith.constant 16 : i32
    %1 = arith.addi %c0_i32, %c16_i32_0 : i32
    %c1_i32 = arith.constant 1 : i32
    scf.for %arg11 = %c0_i32 to %1 step %c1_i32  : i32 {
      %c1_i32_35 = arith.constant 1 : i32
      %93 = arith.muli %arg11, %c1_i32_35 : i32
      %c0_i32_36 = arith.constant 0 : i32
      %94 = arith.addi %c0_i32_36, %93 : i32
      %95 = arith.addi %0, %94 : i32
      %96 = arith.index_cast %95 : i32 to index
      %97 = memref.load %arg1[%96] : memref<16xi32, #tpu.memory_space<smem>>
      %c0_i32_37 = arith.constant 0 : i32
      %c0_i32_38 = arith.constant 0 : i32
      %98 = tpu.memref_slice %arg3[%97, %c0_i32_38] : memref<30x32xf32, #tpu.memory_space<any>> -> memref<1x32xf32, #tpu.memory_space<any>>
      %c0_i32_39 = arith.constant 0 : i32
      %99 = tpu.memref_slice %arg9[%94, %c0_i32_39] : memref<16x32xf32, #tpu.memory_space<vmem>> -> memref<1x32xf32, #tpu.memory_space<vmem>>
      %100 = tpu.memref_slice %arg10[%c0_i32_37] : memref<1x!tpu.dma_semaphore, #tpu.memory_space<semaphore_mem>> -> memref<1x!tpu.dma_semaphore, #tpu.memory_space<semaphore_mem>>
      %101 = tpu.memref_squeeze %100 : memref<1x!tpu.dma_semaphore, #tpu.memory_space<semaphore_mem>> -> memref<!tpu.dma_semaphore, #tpu.memory_space<semaphore_mem>>
      tpu.enqueue_dma source(%98 : memref<1x32xf32, #tpu.memory_space<any>>) target(%99 : memref<1x32xf32, #tpu.memory_space<vmem>>) target_semaphore(%101 : memref<!tpu.dma_semaphore, #tpu.memory_space<semaphore_mem>>)
    }
    %c16_i32_1 = arith.constant 16 : i32
    %c0 = arith.constant 0 : index
    %c0_2 = arith.constant 0 : index
    %2 = vector.load %arg2[%c0, %c0_2] : memref<16x9xi32, #tpu.memory_space<vmem>>, vector<16x9xi32>
    %3 = tpu.iota {dimensions = array<i32: 1>} : vector<16x10xi32>
    %4 = vector.extract_strided_slice %2 {offsets = [0, 0], sizes = [16, 1], strides = [1, 1]} : vector<16x9xi32> to vector<16x1xi32>
    %5 = vector.broadcast %4 : vector<16x1xi32> to vector<16x10xi32>
    %6 = arith.cmpi eq, %3, %5 : vector<16x10xi32>
    %7 = arith.extui %6 : vector<16x10xi1> to vector<16x10xi32>
    %8 = arith.sitofp %7 : vector<16x10xi32> to vector<16x10xf32>
    %c0_3 = arith.constant 0 : index
    %c0_4 = arith.constant 0 : index
    %9 = vector.load %arg4[%c0_3, %c0_4] : memref<10x8xf32, #tpu.memory_space<vmem>>, vector<10x8xf32>
    %cst = arith.constant dense<0.000000e+00> : vector<16x8xf32>
    %10 = tpu.matmul %8, %9, %cst {dimension_numbers = #tpu.dot_dimension_numbers<[1], [0], [0], [1], [0, 0, 1, 1], [], []>} : vector<16x10xf32>, vector<10x8xf32>, vector<16x8xf32> -> vector<16x8xf32>
    %c0_5 = arith.constant 0 : index
    %c0_6 = arith.constant 0 : index
    %11 = vector.load %arg5[%c0_5, %c0_6] : memref<20x16xf32, #tpu.memory_space<vmem>>, vector<20x16xf32>
    %12 = tpu.iota {dimensions = array<i32: 1>} : vector<16x20xi32>
    %c0_7 = arith.constant 0 : index
    %c0_8 = arith.constant 0 : index
    %13 = vector.load %arg6[%c0_7, %c0_8] : memref<48x16xf32, #tpu.memory_space<vmem>>, vector<48x16xf32>
    %cst_9 = arith.constant 0.000000e+00 : f32
    %14 = vector.broadcast %cst_9 : f32 to vector<16x16xf32>
    %15 = vector.extract_strided_slice %2 {offsets = [0, 1], sizes = [16, 1], strides = [1, 1]} : vector<16x9xi32> to vector<16x1xi32>
    %16 = vector.broadcast %15 : vector<16x1xi32> to vector<16x20xi32>
    %17 = arith.cmpi eq, %12, %16 : vector<16x20xi32>
    %18 = arith.extui %17 : vector<16x20xi1> to vector<16x20xi32>
    %19 = arith.sitofp %18 : vector<16x20xi32> to vector<16x20xf32>
    %cst_10 = arith.constant dense<0.000000e+00> : vector<16x16xf32>
    %20 = tpu.matmul %19, %11, %cst_10 {dimension_numbers = #tpu.dot_dimension_numbers<[1], [0], [0], [1], [0, 0, 1, 1], [], []>} : vector<16x20xf32>, vector<20x16xf32>, vector<16x16xf32> -> vector<16x16xf32>
    %21 = vector.extract_strided_slice %2 {offsets = [0, 2], sizes = [16, 1], strides = [1, 1]} : vector<16x9xi32> to vector<16x1xi32>
    %22 = vector.broadcast %21 : vector<16x1xi32> to vector<16x20xi32>
    %23 = arith.cmpi eq, %12, %22 : vector<16x20xi32>
    %24 = arith.extui %23 : vector<16x20xi1> to vector<16x20xi32>
    %25 = arith.sitofp %24 : vector<16x20xi32> to vector<16x20xf32>
    %cst_11 = arith.constant dense<0.000000e+00> : vector<16x16xf32>
    %26 = tpu.matmul %25, %11, %cst_11 {dimension_numbers = #tpu.dot_dimension_numbers<[1], [0], [0], [1], [0, 0, 1, 1], [], []>} : vector<16x20xf32>, vector<20x16xf32>, vector<16x16xf32> -> vector<16x16xf32>
    %27 = tpu.concatenate %14, %20, %26 in 1 : vector<16x16xf32>, vector<16x16xf32>, vector<16x16xf32> -> vector<16x48xf32>
    %cst_12 = arith.constant dense<0.000000e+00> : vector<16x16xf32>
    %28 = tpu.matmul %27, %13, %cst_12 {dimension_numbers = #tpu.dot_dimension_numbers<[1], [0], [0], [1], [0, 0, 1, 1], [], []>} : vector<16x48xf32>, vector<48x16xf32>, vector<16x16xf32> -> vector<16x16xf32>
    %29 = vector.extract_strided_slice %2 {offsets = [0, 3], sizes = [16, 1], strides = [1, 1]} : vector<16x9xi32> to vector<16x1xi32>
    %30 = vector.broadcast %29 : vector<16x1xi32> to vector<16x20xi32>
    %31 = arith.cmpi eq, %12, %30 : vector<16x20xi32>
    %32 = arith.extui %31 : vector<16x20xi1> to vector<16x20xi32>
    %33 = arith.sitofp %32 : vector<16x20xi32> to vector<16x20xf32>
    %cst_13 = arith.constant dense<0.000000e+00> : vector<16x16xf32>
    %34 = tpu.matmul %33, %11, %cst_13 {dimension_numbers = #tpu.dot_dimension_numbers<[1], [0], [0], [1], [0, 0, 1, 1], [], []>} : vector<16x20xf32>, vector<20x16xf32>, vector<16x16xf32> -> vector<16x16xf32>
    %35 = tpu.concatenate %20, %26, %34 in 1 : vector<16x16xf32>, vector<16x16xf32>, vector<16x16xf32> -> vector<16x48xf32>
    %cst_14 = arith.constant dense<0.000000e+00> : vector<16x16xf32>
    %36 = tpu.matmul %35, %13, %cst_14 {dimension_numbers = #tpu.dot_dimension_numbers<[1], [0], [0], [1], [0, 0, 1, 1], [], []>} : vector<16x48xf32>, vector<48x16xf32>, vector<16x16xf32> -> vector<16x16xf32>
    %37 = arith.maximumf %28, %36 : vector<16x16xf32>
    %38 = vector.extract_strided_slice %2 {offsets = [0, 4], sizes = [16, 1], strides = [1, 1]} : vector<16x9xi32> to vector<16x1xi32>
    %39 = vector.broadcast %38 : vector<16x1xi32> to vector<16x20xi32>
    %40 = arith.cmpi eq, %12, %39 : vector<16x20xi32>
    %41 = arith.extui %40 : vector<16x20xi1> to vector<16x20xi32>
    %42 = arith.sitofp %41 : vector<16x20xi32> to vector<16x20xf32>
    %cst_15 = arith.constant dense<0.000000e+00> : vector<16x16xf32>
    %43 = tpu.matmul %42, %11, %cst_15 {dimension_numbers = #tpu.dot_dimension_numbers<[1], [0], [0], [1], [0, 0, 1, 1], [], []>} : vector<16x20xf32>, vector<20x16xf32>, vector<16x16xf32> -> vector<16x16xf32>
    %44 = tpu.concatenate %26, %34, %43 in 1 : vector<16x16xf32>, vector<16x16xf32>, vector<16x16xf32> -> vector<16x48xf32>
    %cst_16 = arith.constant dense<0.000000e+00> : vector<16x16xf32>
    %45 = tpu.matmul %44, %13, %cst_16 {dimension_numbers = #tpu.dot_dimension_numbers<[1], [0], [0], [1], [0, 0, 1, 1], [], []>} : vector<16x48xf32>, vector<48x16xf32>, vector<16x16xf32> -> vector<16x16xf32>
    %46 = arith.maximumf %37, %45 : vector<16x16xf32>
    %47 = vector.extract_strided_slice %2 {offsets = [0, 5], sizes = [16, 1], strides = [1, 1]} : vector<16x9xi32> to vector<16x1xi32>
    %48 = vector.broadcast %47 : vector<16x1xi32> to vector<16x20xi32>
    %49 = arith.cmpi eq, %12, %48 : vector<16x20xi32>
    %50 = arith.extui %49 : vector<16x20xi1> to vector<16x20xi32>
    %51 = arith.sitofp %50 : vector<16x20xi32> to vector<16x20xf32>
    %cst_17 = arith.constant dense<0.000000e+00> : vector<16x16xf32>
    %52 = tpu.matmul %51, %11, %cst_17 {dimension_numbers = #tpu.dot_dimension_numbers<[1], [0], [0], [1], [0, 0, 1, 1], [], []>} : vector<16x20xf32>, vector<20x16xf32>, vector<16x16xf32> -> vector<16x16xf32>
    %53 = tpu.concatenate %34, %43, %52 in 1 : vector<16x16xf32>, vector<16x16xf32>, vector<16x16xf32> -> vector<16x48xf32>
    %cst_18 = arith.constant dense<0.000000e+00> : vector<16x16xf32>
    %54 = tpu.matmul %53, %13, %cst_18 {dimension_numbers = #tpu.dot_dimension_numbers<[1], [0], [0], [1], [0, 0, 1, 1], [], []>} : vector<16x48xf32>, vector<48x16xf32>, vector<16x16xf32> -> vector<16x16xf32>
    %55 = arith.maximumf %46, %54 : vector<16x16xf32>
    %56 = vector.extract_strided_slice %2 {offsets = [0, 6], sizes = [16, 1], strides = [1, 1]} : vector<16x9xi32> to vector<16x1xi32>
    %57 = vector.broadcast %56 : vector<16x1xi32> to vector<16x20xi32>
    %58 = arith.cmpi eq, %12, %57 : vector<16x20xi32>
    %59 = arith.extui %58 : vector<16x20xi1> to vector<16x20xi32>
    %60 = arith.sitofp %59 : vector<16x20xi32> to vector<16x20xf32>
    %cst_19 = arith.constant dense<0.000000e+00> : vector<16x16xf32>
    %61 = tpu.matmul %60, %11, %cst_19 {dimension_numbers = #tpu.dot_dimension_numbers<[1], [0], [0], [1], [0, 0, 1, 1], [], []>} : vector<16x20xf32>, vector<20x16xf32>, vector<16x16xf32> -> vector<16x16xf32>
    %62 = tpu.concatenate %43, %52, %61 in 1 : vector<16x16xf32>, vector<16x16xf32>, vector<16x16xf32> -> vector<16x48xf32>
    %cst_20 = arith.constant dense<0.000000e+00> : vector<16x16xf32>
    %63 = tpu.matmul %62, %13, %cst_20 {dimension_numbers = #tpu.dot_dimension_numbers<[1], [0], [0], [1], [0, 0, 1, 1], [], []>} : vector<16x48xf32>, vector<48x16xf32>, vector<16x16xf32> -> vector<16x16xf32>
    %64 = arith.maximumf %55, %63 : vector<16x16xf32>
    %65 = vector.extract_strided_slice %2 {offsets = [0, 7], sizes = [16, 1], strides = [1, 1]} : vector<16x9xi32> to vector<16x1xi32>
    %66 = vector.broadcast %65 : vector<16x1xi32> to vector<16x20xi32>
    %67 = arith.cmpi eq, %12, %66 : vector<16x20xi32>
    %68 = arith.extui %67 : vector<16x20xi1> to vector<16x20xi32>
    %69 = arith.sitofp %68 : vector<16x20xi32> to vector<16x20xf32>
    %cst_21 = arith.constant dense<0.000000e+00> : vector<16x16xf32>
    %70 = tpu.matmul %69, %11, %cst_21 {dimension_numbers = #tpu.dot_dimension_numbers<[1], [0], [0], [1], [0, 0, 1, 1], [], []>} : vector<16x20xf32>, vector<20x16xf32>, vector<16x16xf32> -> vector<16x16xf32>
    %71 = tpu.concatenate %52, %61, %70 in 1 : vector<16x16xf32>, vector<16x16xf32>, vector<16x16xf32> -> vector<16x48xf32>
    %cst_22 = arith.constant dense<0.000000e+00> : vector<16x16xf32>
    %72 = tpu.matmul %71, %13, %cst_22 {dimension_numbers = #tpu.dot_dimension_numbers<[1], [0], [0], [1], [0, 0, 1, 1], [], []>} : vector<16x48xf32>, vector<48x16xf32>, vector<16x16xf32> -> vector<16x16xf32>
    %73 = arith.maximumf %64, %72 : vector<16x16xf32>
    %74 = vector.extract_strided_slice %2 {offsets = [0, 8], sizes = [16, 1], strides = [1, 1]} : vector<16x9xi32> to vector<16x1xi32>
    %75 = vector.broadcast %74 : vector<16x1xi32> to vector<16x20xi32>
    %76 = arith.cmpi eq, %12, %75 : vector<16x20xi32>
    %77 = arith.extui %76 : vector<16x20xi1> to vector<16x20xi32>
    %78 = arith.sitofp %77 : vector<16x20xi32> to vector<16x20xf32>
    %cst_23 = arith.constant dense<0.000000e+00> : vector<16x16xf32>
    %79 = tpu.matmul %78, %11, %cst_23 {dimension_numbers = #tpu.dot_dimension_numbers<[1], [0], [0], [1], [0, 0, 1, 1], [], []>} : vector<16x20xf32>, vector<20x16xf32>, vector<16x16xf32> -> vector<16x16xf32>
    %80 = tpu.concatenate %61, %70, %79 in 1 : vector<16x16xf32>, vector<16x16xf32>, vector<16x16xf32> -> vector<16x48xf32>
    %cst_24 = arith.constant dense<0.000000e+00> : vector<16x16xf32>
    %81 = tpu.matmul %80, %13, %cst_24 {dimension_numbers = #tpu.dot_dimension_numbers<[1], [0], [0], [1], [0, 0, 1, 1], [], []>} : vector<16x48xf32>, vector<48x16xf32>, vector<16x16xf32> -> vector<16x16xf32>
    %82 = arith.maximumf %73, %81 : vector<16x16xf32>
    %83 = tpu.concatenate %70, %79, %14 in 1 : vector<16x16xf32>, vector<16x16xf32>, vector<16x16xf32> -> vector<16x48xf32>
    %cst_25 = arith.constant dense<0.000000e+00> : vector<16x16xf32>
    %84 = tpu.matmul %83, %13, %cst_25 {dimension_numbers = #tpu.dot_dimension_numbers<[1], [0], [0], [1], [0, 0, 1, 1], [], []>} : vector<16x48xf32>, vector<48x16xf32>, vector<16x16xf32> -> vector<16x16xf32>
    %85 = arith.maximumf %82, %84 : vector<16x16xf32>
    %c0_26 = arith.constant 0 : index
    %c0_27 = arith.constant 0 : index
    %86 = vector.load %arg7[%c0_26, %c0_27] : memref<1x16xf32, #tpu.memory_space<vmem>>, vector<1x16xf32>
    %87 = vector.broadcast %86 : vector<1x16xf32> to vector<16x16xf32>
    %88 = arith.addf %85, %87 : vector<16x16xf32>
    %c0_i32_28 = arith.constant 0 : i32
    %c16_i32_29 = arith.constant 16 : i32
    %89 = arith.addi %c0_i32_28, %c16_i32_29 : i32
    %c1_i32_30 = arith.constant 1 : i32
    scf.for %arg11 = %c0_i32_28 to %89 step %c1_i32_30  : i32 {
      %c0_i32_35 = arith.constant 0 : i32
      %c0_i32_36 = arith.constant 0 : i32
      %c0_i32_37 = arith.constant 0 : i32
      %93 = tpu.memref_slice %arg3[%c0_i32_36, %c0_i32_37] : memref<30x32xf32, #tpu.memory_space<any>> -> memref<1x32xf32, #tpu.memory_space<any>>
      %c0_i32_38 = arith.constant 0 : i32
      %c0_i32_39 = arith.constant 0 : i32
      %94 = tpu.memref_slice %arg9[%c0_i32_38, %c0_i32_39] : memref<16x32xf32, #tpu.memory_space<vmem>> -> memref<1x32xf32, #tpu.memory_space<vmem>>
      %95 = tpu.memref_slice %arg10[%c0_i32_35] : memref<1x!tpu.dma_semaphore, #tpu.memory_space<semaphore_mem>> -> memref<1x!tpu.dma_semaphore, #tpu.memory_space<semaphore_mem>>
      %96 = tpu.memref_squeeze %95 : memref<1x!tpu.dma_semaphore, #tpu.memory_space<semaphore_mem>> -> memref<!tpu.dma_semaphore, #tpu.memory_space<semaphore_mem>>
      tpu.wait_dma2 semaphore(%96 : memref<!tpu.dma_semaphore, #tpu.memory_space<semaphore_mem>>) src(%93 : memref<1x32xf32, #tpu.memory_space<any>>) dst(%94 : memref<1x32xf32, #tpu.memory_space<vmem>>)
    }
    %c0_31 = arith.constant 0 : index
    %c0_32 = arith.constant 0 : index
    %90 = vector.load %arg9[%c0_31, %c0_32] : memref<16x32xf32, #tpu.memory_space<vmem>>, vector<16x32xf32>
    %91 = tpu.concatenate %90, %10, %88 in 1 : vector<16x32xf32>, vector<16x8xf32>, vector<16x16xf32> -> vector<16x56xf32>
    %c0_33 = arith.constant 0 : index
    %c0_34 = arith.constant 0 : index
    %92 = vector.load %arg8[%c0_33, %c0_34] : memref<16x56xf32, #tpu.memory_space<vmem>>, vector<16x56xf32>
    tpu.vector_store %arg8[%c0_33, %c0_34], %91 {strides = array<i32>} : memref<16x56xf32, #tpu.memory_space<vmem>>, vector<16x56xf32>,
    return
  }
  func.func @transform_0(%arg0: i32, %arg1: memref<16xi32, #tpu.memory_space<smem>>) -> (i32, i32) {
    %c0_i32 = arith.constant 0 : i32
    %c0_i32_0 = arith.constant 0 : i32
    return %arg0, %c0_i32 : i32, i32
  }
  func.func @transform_2(%arg0: i32, %arg1: memref<16xi32, #tpu.memory_space<smem>>) -> (i32, i32) {
    %c0_i32 = arith.constant 0 : i32
    %c0_i32_0 = arith.constant 0 : i32
    %c0_i32_1 = arith.constant 0 : i32
    return %c0_i32, %c0_i32_0 : i32, i32
  }
  func.func @transform_3(%arg0: i32, %arg1: memref<16xi32, #tpu.memory_space<smem>>) -> (i32, i32) {
    %c0_i32 = arith.constant 0 : i32
    %c0_i32_0 = arith.constant 0 : i32
    %c0_i32_1 = arith.constant 0 : i32
    return %c0_i32, %c0_i32_0 : i32, i32
  }
  func.func @transform_4(%arg0: i32, %arg1: memref<16xi32, #tpu.memory_space<smem>>) -> (i32, i32) {
    %c0_i32 = arith.constant 0 : i32
    %c0_i32_0 = arith.constant 0 : i32
    %c0_i32_1 = arith.constant 0 : i32
    return %c0_i32, %c0_i32_0 : i32, i32
  }
  func.func @transform_5(%arg0: i32, %arg1: memref<16xi32, #tpu.memory_space<smem>>) -> (i32, i32) {
    %c0_i32 = arith.constant 0 : i32
    %c0_i32_0 = arith.constant 0 : i32
    %c0_i32_1 = arith.constant 0 : i32
    return %c0_i32, %c0_i32_0 : i32, i32
  }
  func.func @transform_6(%arg0: i32, %arg1: memref<16xi32, #tpu.memory_space<smem>>) -> (i32, i32) {
    %c0_i32 = arith.constant 0 : i32
    %c0_i32_0 = arith.constant 0 : i32
    return %arg0, %c0_i32 : i32, i32
  }
}

</mosaic_0001>

<bundles_post_ra>
// kernel: tpu_custom_call.1
= control target key start
LH: loop header
LB: loop body
LE: loop exit
PB: predicated region body
PF: predicated region fallthrough
CT: control target
= control target key end

     0   :  { %s2864_s0 = inlined_call_operand.vmem [shape: s32[16], index: 0, kind: input, shape index: {}]   ;;  %s2865_s1 = inlined_call_operand.vmem [shape: s32[16,9], index: 1, kind: input, shape index: {}]   ;;  %s2866_s2 = inlined_call_operand.vmem [shape: f32[30,32], index: 2, kind: input, shape index: {}]   ;;  %s2867_s3 = inlined_call_operand.vmem [shape: f32[10,8], index: 3, kind: input, shape index: {}]   ;;  %s2868_s4 = inlined_call_operand.vmem [shape: f32[20,16], index: 4, kind: input, shape index: {}]   ;;  %s2869_s5 = inlined_call_operand.vmem [shape: f32[48,16], index: 5, kind: input, shape index: {}]   ;;  %s2870_s6 = inlined_call_operand.vmem [shape: f32[1,16], index: 6, kind: input, shape index: {}]   ;;  %s2871_s7 = inlined_call_operand.hbm [shape: f32[16,56], index: 7, kind: output, shape index: {}]  }
   0x1   :  { %s12_s26 = sshll.u32 %s2864_s0, 4  ;;  %s13_s26 = int_to_ptr.vmem [resolvable:$true] %s12_s26 }
   0x2   :  { %s2256_s27 = scalar_lea.vmem %s13_s26, 16  ;;  %p2261_p1 = scmp.lt.s32.totalorder %s13_s26, %s13_s26 }
   0x3   :  { %p2257_p0 = scmp.ne.s32.totalorder %s13_s26, %s2256_s27  ;;  %p2262_p2 = scmp.lt.s32.totalorder %s2256_s27, %s2256_s27 }
   0x5   :  { %p2263_p3 = por %p2262_p2, %p2261_p1 }
   0x7   :  { %p2264_p4 = pnand %p2263_p3, %p2257_p0 }
   0x9   :  { %2267 = shalt.err (!%p2264_p4)  }
   0xa   :  { %s2310_s28 = smov [#allocation5]  }
   0xb   :  { %15 = dma.vmem_to_smem %s13_s26, 16, %s2310_s28, [#allocation4] }
   0xc   :  { %2296 = dma.done.wait [#allocation4], 16 }
   0xd   :  { %2297 = vsyncadd [#allocation4], 4294967280 }
   0xe   :  { %17 = sfence }
   0xf   :  { %18 = vsyncpa [#allocation7], 0  ;;  %s2302_s29 = smov 0  }
  0x10 LB: > { %s37_s30 = sld [smem:[#allocation5 + %s2304_s29]]  ;;  %s39_s10 = scalar_lea.vmem [#allocation2], %s2304_s29  ;;  %s2304_s29 = sphi %s2302_s29, %s35_s29  }
  0x16   : > { %s38_s9 = scalar_lea.vmem %s2866_s2, %s37_s30 }
  0x17   : > { %v58_v0 = vld [vmem:[%s38_s9] sm:$0x1] }
  0x18   : > { %59 = vst [vmem:[%s39_s10] sm:$0x1] %v58_v0 }
  0x19   : > { %85 = vsyncadd [#allocation3], 16  ;;  %s35_s29 = sadd.s32 1, %s2304_s29  }
  0x1a   : > { %p32_p5 = scmp.ge.s32.totalorder %s35_s29, 16  }
  0x1b   :  { %v2376_v1 = vld [vmem:[%s2865_s1] sm:$0xff] (%p32_p5)  ;;  %v2311_v2 = vmov (%p32_p5), 1   ;;  %v2312_v3 = vmov (%p32_p5), 0   ;;  %v2381_v4 = vld [vmem:[%s2868_s4 + $0x10] sm:$0xf] (%p32_p5)  ;;  %vm218_vm0 = vcmask (%p32_p5), 1043456   ;;  %v88_v13 = vlaneseq (%p32_p5) }
  0x1c   :  { %34 = sbr.rel (!%p32_p5) target bundleno = 16 (0x10), region = 96  ;;  %2243 = vset.pattern.permute.xlu1 (%p32_p5), %v2311_v2  ;;  %2242 = vset.pattern.permute.xlu0 (%p32_p5), %v2312_v3  ;;  %v103_v5 = vld [vmem:[%s2867_s3 + $0x8] sm:$0x3] (%p32_p5)  ;;  %vm111_vm1 = vcmask (%p32_p5), 1041408   ;;  %v102_v7 = vld [vmem:[%s2867_s3] sm:$0xff] (%p32_p5)  ;;  %v2313_v10 = vmov (%p32_p5), 2  }
  0x1d   :  { %200 = vperm.xlu1 (%p32_p5), %2243, %v2376_v1   ;;  %91 = vperm.xlu0 (%p32_p5), %2242, %v2376_v1   ;;  %v2391_v6 = vld [vmem:[%s2868_s4 + $0x8] sm:$0xff] (%p32_p5)  ;;  %v2409_v9 = vld [vmem:[%s2868_s4] sm:$0xff] (%p32_p5)  ;;  %v2314_v11 = vmov (%p32_p5), 3   ;;  %v2315_v12 = vmov (%p32_p5), 4   ;;  %v2423_v14 = vand.u32 (%p32_p5), 127, %v88_v13  ;;  %vm104_vm2 = vcmask (%p32_p5), 80896  }
  0x1e   :  { %v2399_v8 = vld [vmem:[%s2865_s1 + $0x8] sm:$0xff] (%p32_p5)  ;;  %2017 = vmatprep.subr.msk.mxu1 (%p32_p5), %vm218_vm0, %v2381_v4  ;;  %2010 = vmatprep.subr.msk.mxu0 (%p32_p5), %vm111_vm1, %v103_v5  ;;  %vm211_vm3 = vcmask (%p32_p5), 162816   ;;  %v2316_v17 = vmov (%p32_p5), 0.0   ;;  %v2472_v33 = vld [vmem:[%s2869_s5 + $0x20] sm:$0xff] (%p32_p5)  ;;  %v2479_v34 = vld [vmem:[%s2869_s5 + $0x18] sm:$0xff] (%p32_p5)  ;;  %v2318_v44 = vmov (%p32_p5), 5  }
  0x1f   :  { %2018 = vmatpush3.msk.msra.mxu1 (%p32_p5), %vm218_vm0, %v2381_v4  ;;  %2011 = vmatpush3.msk.msra.mxu0 (%p32_p5), %vm111_vm1, %v103_v5  ;;  %v2464_v32 = vld [vmem:[%s2869_s5 + $0x28] sm:$0xff] (%p32_p5)  ;;  %v2486_v35 = vld [vmem:[%s2869_s5 + $0x10] sm:$0xff] (%p32_p5)  ;;  %v2508_v37 = vld [vmem:[%s2869_s5] sm:$0xff] (%p32_p5)  ;;  %s2319_s9 = smov (%p32_p5), 32   ;;  %v2320_v47 = vmov (%p32_p5), 6   ;;  %vm409_vm12 = vcmask (%p32_p5), 261120  }
  0x20   :  { %2019 = vmatprep.subr.mxu1 (%p32_p5), %v2391_v6  ;;  %2012 = vmatprep.subr.mxu0 (%p32_p5), %v102_v7  ;;  %v2499_v36 = vld [vmem:[%s2869_s5 + $0x8] sm:$0xff] (%p32_p5)  ;;  %s2317_s5 = smov (%p32_p5), 16   ;;  %vm406_vm13 = vcmask (%p32_p5), 130048   ;;  %vm412_vm14 = vcmask (%p32_p5), 392192   ;;  %v2321_v13 = vmov (%p32_p5), 7   ;;  %s2306_s12 = smov (%p32_p5), 0  }
  0x21   :  { %203 = vperm.xlu1 %2243, %v2399_v8   ;;  %94 = vperm.xlu0 %2242, %v2399_v8  }
  0x22   :  { %2020 = vmatpush3.msra.mxu1 %v2391_v6  ;;  %2013 = vmatpush3.msra.mxu0 %v102_v7 }
  0x23   :  { %2021 = vmatprep.subr.mxu1 %v2409_v9  ;;  %2026 = vmatprep.subr.msk.mxu0 %vm218_vm0, %v2381_v4 }
  0x24   :  { %2022 = vmatpush3.msra.mxu1 %v2409_v9 }
  0x25   :  { %2244 = vset.pattern.permute.xlu0 %v2313_v10  ;;  %2245 = vset.pattern.permute.xlu1 %v2313_v10 }
  0x26   :  { %298 = vperm.xlu0 %2244, %v2376_v1   ;;  %301 = vperm.xlu1 %2245, %v2399_v8  }
  0x27   :  { %2035 = vmatprep.subr.mxu1 %v2464_v32 }
  0x2a   :  { %2246 = vset.pattern.permute.xlu1 %v2314_v11  ;;  %2247 = vset.pattern.permute.xlu0 %v2314_v11 }
  0x2b   :  { %495 = vperm.xlu1 %2246, %v2376_v1   ;;  %498 = vperm.xlu0 %2247, %v2399_v8  }
  0x2f   :  { %2248 = vset.pattern.permute.xlu1 %v2315_v12  ;;  %2249 = vset.pattern.permute.xlu0 %v2315_v12 }
  0x30   :  { %689 = vperm.xlu1 %2248, %v2376_v1  }
  0x34   :  { %2251 = vset.pattern.permute.xlu1 %v2320_v47 }
  0x98   :  { %v201_v15 = vpop.permute.xlu1 %200  ;;  %v92_v16 = vpop.permute.xlu0 %91 }
  0x99   :  { %vm205_vm4 = vcmp.eq.s32.totalorder %v2423_v14, %v201_v15  ;;  %vm96_vm5 = vcmp.eq.s32.totalorder %v2423_v14, %v92_v16 }
  0x9a   :  { %v1839_v18 = vsel %vm96_vm5, 1.0, %v2316_v17  ;;  %v1844_v19 = vsel %vm205_vm4, 1.0, %v2316_v17 }
  0x9b   :  { %2014 = vmatprep.mubr.msk.f32.mxu0 %vm104_vm2, %v1839_v18  ;;  %2023 = vmatprep.mubr.msk.f32.mxu1 %vm211_vm3, %v1844_v19 }
  0x9c   :  { %v204_v20 = vpop.permute.xlu1 %203  ;;  %v95_v21 = vpop.permute.xlu0 %94 }
  0x9d   :  { %vm206_vm6 = vcmp.eq.s32.totalorder %v2423_v14, %v204_v20  ;;  %vm97_vm7 = vcmp.eq.s32.totalorder %v2423_v14, %v95_v21 }
  0x9e   :  { %v1845_v22 = vsel %vm206_vm6, 1.0, %v2316_v17  ;;  %v1840_v23 = vsel %vm97_vm7, 1.0, %v2316_v17 }
  0x9f   :  { %2015 = vmatmul.mubr.msk.f32.vlgmr.msra.gmra.mxu0 %vm104_vm2, %v1840_v23  ;;  %2024 = vmatmul.mubr.msk.f32.vlgmr.msra.gmra.mxu1 %vm211_vm3, %v1845_v22 }
  0xa0   :  { %2027 = vmatpush3.msk.msra.mxu0 %vm218_vm0, %v2381_v4  ;;  %2036 = vmatpush3.msra.mxu1 %v2464_v32 }
  0xa1   :  { %2028 = vmatprep.subr.mxu0 %v2391_v6  ;;  %v299_v24 = vpop.permute.xlu0 %298  ;;  %v302_v25 = vpop.permute.xlu1 %301  ;;  %2037 = vmatprep.subr.mxu1 %v2472_v33 }
  0xa2   :  { %vm303_vm8 = vcmp.eq.s32.totalorder %v2423_v14, %v299_v24  ;;  %vm304_vm9 = vcmp.eq.s32.totalorder %v2423_v14, %v302_v25  ;;  %2029 = vmatpush3.msra.mxu0 %v2391_v6  ;;  %2038 = vmatpush3.msra.mxu1 %v2472_v33 }
  0xa3   :  { %v1849_v26 = vsel %vm303_vm8, 1.0, %v2316_v17  ;;  %v1850_v27 = vsel %vm304_vm9, 1.0, %v2316_v17  ;;  %2030 = vmatprep.subr.mxu0 %v2409_v9  ;;  %2039 = vmatprep.subr.mxu1 %v2479_v34 }
  0xa4   :  { %2031 = vmatpush3.msra.mxu0 %v2409_v9  ;;  %2032 = vmatprep.mubr.msk.f32.mxu0 %vm211_vm3, %v1849_v26  ;;  %v2322_v26 = vmov 8  }
  0xa5   :  { %2033 = vmatmul.mubr.msk.f32.vlgmr.msra.gmra.mxu0 %vm211_vm3, %v1850_v27  ;;  %2050 = vmatprep.subr.msk.mxu0 %vm218_vm0, %v2381_v4 }
  0xa6   :  { %2051 = vmatpush3.msk.msra.mxu0 %vm218_vm0, %v2381_v4  ;;  %v496_v28 = vpop.permute.xlu1 %495  ;;  %v499_v29 = vpop.permute.xlu0 %498  ;;  %2040 = vmatpush3.msra.mxu1 %v2479_v34 }
  0xa7   :  { %vm500_vm10 = vcmp.eq.s32.totalorder %v2423_v14, %v496_v28  ;;  %2052 = vmatprep.subr.mxu0 %v2391_v6  ;;  %vm501_vm11 = vcmp.eq.s32.totalorder %v2423_v14, %v499_v29  ;;  %2041 = vmatprep.subr.mxu1 %v2486_v35 }
  0xa8   :  { %v1856_v30 = vsel %vm500_vm10, 1.0, %v2316_v17  ;;  %2053 = vmatpush3.msra.mxu0 %v2391_v6  ;;  %v1857_v31 = vsel %vm501_vm11, 1.0, %v2316_v17  ;;  %2042 = vmatpush3.msra.mxu1 %v2486_v35 }
  0xa9   :  { %2054 = vmatprep.subr.mxu0 %v2409_v9  ;;  %2056 = vmatprep.mubr.msk.f32.mxu0 %vm211_vm3, %v1856_v30 }
  0xaa   :  { %2055 = vmatpush3.msra.mxu0 %v2409_v9  ;;  %2043 = vmatprep.subr.mxu1 %v2499_v36 }
  0xab   :  { %2057 = vmatmul.mubr.msk.f32.vlgmr.msra.gmra.mxu0 %vm211_vm3, %v1857_v31  ;;  %2059 = vmatprep.subr.mxu0 %v2464_v32  ;;  %v690_v48 = vpop.permute.xlu1 %689 }
  0xac   :  { %2060 = vmatpush3.msra.mxu0 %v2464_v32  ;;  %2044 = vmatpush3.msra.mxu1 %v2499_v36  ;;  %vm694_vm15 = vcmp.eq.s32.totalorder %v2423_v14, %v690_v48 }
  0xad   :  { %2061 = vmatprep.subr.mxu0 %v2472_v33  ;;  %2045 = vmatprep.subr.mxu1 %v2508_v37  ;;  %v1863_v58 = vsel %vm694_vm15, 1.0, %v2316_v17 }
  0xae   :  { %2062 = vmatpush3.msra.mxu0 %v2472_v33  ;;  %2046 = vmatpush3.msra.mxu1 %v2508_v37 }
  0xaf   :  { %2063 = vmatprep.subr.mxu0 %v2479_v34  ;;  %2074 = vmatprep.subr.msk.mxu1 %vm218_vm0, %v2381_v4 }
  0xb0   :  { %2064 = vmatpush3.msra.mxu0 %v2479_v34 }
  0xb1   :  { %2065 = vmatprep.subr.mxu0 %v2486_v35 }
  0xb2   :  { %2066 = vmatpush3.msra.mxu0 %v2486_v35 }
  0xb3   :  { %2067 = vmatprep.subr.mxu0 %v2499_v36 }
  0xb4   :  { %2068 = vmatpush3.msra.mxu0 %v2499_v36 }
  0xb5   :  { %2069 = vmatprep.subr.mxu0 %v2508_v37 }
  0xb6   :  { %2070 = vmatpush3.msra.mxu0 %v2508_v37 }
  0xb7   :  { %2098 = vmatprep.subr.msk.mxu0 %vm218_vm0, %v2381_v4 }
 0x15f   :  { %v2515_v38 = vpop.f32.mrf.mxu0  ;;  %v2517_v39 = vpop.f32.mrf.mxu1 }
 0x160   :  { %394 = vrot.lane.b32.xlu0 %v2517_v39, %s2317_s5 }
 0x161   :  { %v2525_v40 = vpop.f32.mrf.mxu0  ;;  %v2527_v41 = vpop.f32.mrf.mxu1 }
 0x162   :  { %392 = vrot.lane.b32.xlu1 %v2527_v41, %s2317_s5 }
 0x164   :  { %692 = vperm.xlu0 %2249, %v2399_v8  }
 0x165   :  { %v2532_v42 = vpop.f32.mrf.mxu0 }
 0x167   :  { %v2534_v43 = vpop.f32.mrf.mxu0 }
 0x168   :  { %2250 = vset.pattern.permute.xlu0 %v2318_v44  ;;  %400 = vrot.lane.b32.xlu1 %v2534_v43, %s2319_s9 }
 0x169   :  { %883 = vperm.xlu0 %2250, %v2376_v1  }
 0x16b   :  { %v2544_v45 = vpop.f32.mrf.mxu0 }
 0x16c   :  { %402 = vrot.lane.b32.xlu1 %v2532_v42, %s2319_s9 }
 0x16d   :  { %886 = vperm.xlu0 %2250, %v2399_v8   ;;  %v2550_v46 = vpop.f32.mrf.mxu0 }
 0x170   :  { %589 = vrot.lane.b32.xlu1 %v2532_v42, %s2317_s5 }
 0x171   :  { %783 = vrot.lane.b32.xlu0 %v2544_v45, %s2317_s5 }
 0x172   :  { %2252 = vset.pattern.permute.xlu0 %v2320_v47 }
 0x174   :  { %587 = vrot.lane.b32.xlu1 %v2534_v43, %s2317_s5 }
 0x175   :  { %781 = vrot.lane.b32.xlu0 %v2550_v46, %s2317_s5 }
 0x178   :  { %597 = vrot.lane.b32.xlu1 %v2544_v45, %s2319_s9 }
 0x179   :  { %1080 = vperm.xlu0 %2252, %v2399_v8  }
 0x17c   :  { %595 = vrot.lane.b32.xlu1 %v2550_v46, %s2319_s9 }
 0x17d   :  { %2253 = vset.pattern.permute.xlu0 %v2321_v13 }
 0x17e   :  { %1271 = vperm.xlu0 %2253, %v2376_v1  }
 0x180   :  { %1077 = vperm.xlu1 %2251, %v2376_v1  }
 0x182   :  { %1274 = vperm.xlu0 %2253, %v2399_v8  }
 0x184   :  { %2254 = vset.pattern.permute.xlu1 %v2322_v26 }
 0x186   :  { %2255 = vset.pattern.permute.xlu0 %v2322_v26 }
 0x1d2   :  { %v395_v52 = vpop.permute.xlu0 %394 }
 0x1d3   :  { %v408_v54 = vsel %vm406_vm13, 0.0, %v395_v52 }
 0x1d4   :  { %v393_v49 = vpop.permute.xlu1 %392 }
 0x1d5   :  { %v407_v50 = vsel %vm406_vm13, 0.0, %v393_v49 }
 0x1da   :  { %v401_v51 = vpop.permute.xlu1 %400 }
 0x1db   :  { %v410_v53 = vsel %vm409_vm12, %v407_v50, %v401_v51 }
 0x1dc   :  { %2047 = vmatprep.mubr.msk.f32.mxu1 %vm412_vm14, %v410_v53 }
 0x1de   :  { %v403_v55 = vpop.permute.xlu1 %402 }
 0x1df   :  { %v411_v56 = vsel %vm409_vm12, %v408_v54, %v403_v55  ;;  %v693_v57 = vpop.permute.xlu0 %692 }
 0x1e0   :  { %2048 = vmatmul.mubr.msk.f32.vlgmr.msra.gmra.mxu1 %vm412_vm14, %v411_v56  ;;  %vm695_vm1 = vcmp.eq.s32.totalorder %v2423_v14, %v693_v57 }
 0x1e1   :  { %2075 = vmatpush3.msk.msra.mxu1 %vm218_vm0, %v2381_v4  ;;  %2080 = vmatprep.mubr.msk.f32.mxu1 %vm211_vm3, %v1863_v58  ;;  %v1864_v60 = vsel %vm695_vm1, 1.0, %v2316_v17 }
 0x1e2   :  { %2076 = vmatprep.subr.mxu1 %v2391_v6  ;;  %v590_v59 = vpop.permute.xlu1 %589 }
 0x1e3   :  { %2077 = vmatpush3.msra.mxu1 %v2391_v6  ;;  %v602_v3 = vsel %vm406_vm13, %v2517_v39, %v590_v59 }
 0x1e4   :  { %2078 = vmatprep.subr.mxu1 %v2409_v9  ;;  %v884_v62 = vpop.permute.xlu0 %883 }
 0x1e5   :  { %2079 = vmatpush3.msra.mxu1 %v2409_v9  ;;  %vm888_vm2 = vcmp.eq.s32.totalorder %v2423_v14, %v884_v62 }
 0x1e6   :  { %2081 = vmatmul.mubr.msk.f32.vlgmr.msra.gmra.mxu1 %vm211_vm3, %v1864_v60  ;;  %v588_v61 = vpop.permute.xlu1 %587  ;;  %2083 = vmatprep.subr.mxu1 %v2464_v32  ;;  %v1870_v5 = vsel %vm888_vm2, 1.0, %v2316_v17 }
 0x1e7   :  { %2084 = vmatpush3.msra.mxu1 %v2464_v32  ;;  %v601_v0 = vsel %vm406_vm13, %v2527_v41, %v588_v61 }
 0x1e8   :  { %2085 = vmatprep.subr.mxu1 %v2472_v33  ;;  %v887_v10 = vpop.permute.xlu0 %886 }
 0x1e9   :  { %2086 = vmatpush3.msra.mxu1 %v2472_v33  ;;  %vm889_vm4 = vcmp.eq.s32.totalorder %v2423_v14, %v887_v10 }
 0x1ea   :  { %v598_v63 = vpop.permute.xlu1 %597  ;;  %2087 = vmatprep.subr.mxu1 %v2479_v34  ;;  %v1871_v12 = vsel %vm889_vm4, 1.0, %v2316_v17 }
 0x1eb   :  { %2088 = vmatpush3.msra.mxu1 %v2479_v34  ;;  %v604_v11 = vsel %vm409_vm12, %v602_v3, %v598_v63 }
 0x1ec   :  { %2089 = vmatprep.subr.mxu1 %v2486_v35  ;;  %v784_v27 = vpop.permute.xlu0 %783 }
 0x1ed   :  { %2090 = vmatpush3.msra.mxu1 %v2486_v35  ;;  %v796_v41 = vsel %vm406_vm13, %v2532_v42, %v784_v27 }
 0x1ee   :  { %v596_v2 = vpop.permute.xlu1 %595  ;;  %2091 = vmatprep.subr.mxu1 %v2499_v36 }
 0x1ef   :  { %v603_v7 = vsel %vm409_vm12, %v601_v0, %v596_v2  ;;  %2092 = vmatpush3.msra.mxu1 %v2499_v36 }
 0x1f0   :  { %2071 = vmatprep.mubr.msk.f32.mxu0 %vm412_vm14, %v603_v7  ;;  %2093 = vmatprep.subr.mxu1 %v2508_v37  ;;  %v782_v29 = vpop.permute.xlu0 %781 }
 0x1f1   :  { %2072 = vmatmul.mubr.msk.f32.vlgmr.msra.gmra.mxu0 %vm412_vm14, %v604_v11  ;;  %2094 = vmatpush3.msra.mxu1 %v2508_v37  ;;  %v795_v30 = vsel %vm406_vm13, %v2534_v43, %v782_v29 }
 0x1f2   :  { %2099 = vmatpush3.msk.msra.mxu0 %vm218_vm0, %v2381_v4  ;;  %2104 = vmatprep.mubr.msk.f32.mxu0 %vm211_vm3, %v1870_v5 }
 0x1f3   :  { %2100 = vmatprep.subr.mxu0 %v2391_v6  ;;  %2122 = vmatprep.subr.msk.mxu1 %vm218_vm0, %v2381_v4 }
 0x1f4   :  { %2101 = vmatpush3.msra.mxu0 %v2391_v6 }
 0x1f5   :  { %2102 = vmatprep.subr.mxu0 %v2409_v9 }
 0x1f6   :  { %2103 = vmatpush3.msra.mxu0 %v2409_v9 }
 0x1f7   :  { %2105 = vmatmul.mubr.msk.f32.vlgmr.msra.gmra.mxu0 %vm211_vm3, %v1871_v12  ;;  %2107 = vmatprep.subr.mxu0 %v2464_v32 }
 0x1f8   :  { %2108 = vmatpush3.msra.mxu0 %v2464_v32 }
 0x1f9   :  { %2109 = vmatprep.subr.mxu0 %v2472_v33 }
 0x1fa   :  { %2110 = vmatpush3.msra.mxu0 %v2472_v33 }
 0x1fb   :  { %2111 = vmatprep.subr.mxu0 %v2479_v34  ;;  %v1078_v28 = vpop.permute.xlu1 %1077 }
 0x1fc   :  { %2112 = vmatpush3.msra.mxu0 %v2479_v34  ;;  %vm1082_vm5 = vcmp.eq.s32.totalorder %v2423_v14, %v1078_v28 }
 0x1fd   :  { %2113 = vmatprep.subr.mxu0 %v2486_v35  ;;  %v1877_v47 = vsel %vm1082_vm5, 1.0, %v2316_v17 }
 0x1fe   :  { %2114 = vmatpush3.msra.mxu0 %v2486_v35 }
 0x1ff   :  { %2115 = vmatprep.subr.mxu0 %v2499_v36 }
 0x200   :  { %2116 = vmatpush3.msra.mxu0 %v2499_v36 }
 0x201   :  { %2117 = vmatprep.subr.mxu0 %v2508_v37 }
 0x202   :  { %2118 = vmatpush3.msra.mxu0 %v2508_v37 }
 0x203   :  { %2146 = vmatprep.subr.msk.mxu0 %vm218_vm0, %v2381_v4 }
 0x2a0   :  { %v2628_v15 = vpop.f32.mrf.mxu1 }
 0x2a2   :  { %v2630_v16 = vpop.f32.mrf.mxu1 }
 0x2a6   :  { %v2632_v18 = vpop.f32.mrf.mxu1 }
 0x2a8   :  { %v2634_v19 = vpop.f32.mrf.mxu1 }
 0x2a9   :  { %789 = vrot.lane.b32.xlu1 %v2634_v19, %s2319_s9 }
 0x2ad   :  { %791 = vrot.lane.b32.xlu1 %v2632_v18, %s2319_s9 }
 0x2b1   :  { %977 = vrot.lane.b32.xlu1 %v2632_v18, %s2317_s5  ;;  %v2642_v20 = vpop.f32.mrf.mxu0 }
 0x2b2   :  { %v687_v21 = vmax.f32 %v2628_v15, %v2642_v20 }
 0x2b3   :  { %v2646_v22 = vpop.f32.mrf.mxu0 }
 0x2b4   :  { %v686_v23 = vmax.f32 %v2630_v16, %v2646_v22 }
 0x2b5   :  { %975 = vrot.lane.b32.xlu1 %v2634_v19, %s2317_s5 }
 0x2b7   :  { %v2652_v24 = vpop.f32.mrf.mxu0 }
 0x2b8   :  { %1171 = vrot.lane.b32.xlu0 %v2652_v24, %s2317_s5 }
 0x2b9   :  { %985 = vrot.lane.b32.xlu1 %v2652_v24, %s2319_s9  ;;  %v2658_v25 = vpop.f32.mrf.mxu0 }
 0x2bc   :  { %1169 = vrot.lane.b32.xlu0 %v2658_v25, %s2317_s5 }
 0x2bd   :  { %983 = vrot.lane.b32.xlu1 %v2658_v25, %s2319_s9 }
 0x2c0   :  { %1468 = vperm.xlu0 %2255, %v2399_v8   ;;  %v1081_v8 = vpop.permute.xlu0 %1080 }
 0x2c1   :  { %1465 = vperm.xlu1 %2254, %v2376_v1   ;;  %vm1083_vm6 = vcmp.eq.s32.totalorder %v2423_v14, %v1081_v8 }
 0x2c2   :  { %v1878_v42 = vsel %vm1083_vm6, 1.0, %v2316_v17 }
 0x2c4   :  { %v1272_v49 = vpop.permute.xlu0 %1271 }
 0x2c5   :  { %vm1276_vm7 = vcmp.eq.s32.totalorder %v2423_v14, %v1272_v49 }
 0x2c6   :  { %v1884_v53 = vsel %vm1276_vm7, 1.0, %v2316_v17 }
 0x2c8   :  { %v1275_v56 = vpop.permute.xlu0 %1274 }
 0x2c9   :  { %vm1277_vm8 = vcmp.eq.s32.totalorder %v2423_v14, %v1275_v56 }
 0x31b   :  { %v790_v31 = vpop.permute.xlu1 %789 }
 0x31c   :  { %v797_v39 = vsel %vm409_vm12, %v795_v30, %v790_v31 }
 0x31d   :  { %2095 = vmatprep.mubr.msk.f32.mxu1 %vm412_vm14, %v797_v39 }
 0x31f   :  { %v792_v44 = vpop.permute.xlu1 %791 }
 0x320   :  { %v798_v1 = vsel %vm409_vm12, %v796_v41, %v792_v44 }
 0x321   :  { %2096 = vmatmul.mubr.msk.f32.vlgmr.msra.gmra.mxu1 %vm412_vm14, %v798_v1 }
 0x322   :  { %2123 = vmatpush3.msk.msra.mxu1 %vm218_vm0, %v2381_v4  ;;  %2128 = vmatprep.mubr.msk.f32.mxu1 %vm211_vm3, %v1877_v47 }
 0x323   :  { %2124 = vmatprep.subr.mxu1 %v2391_v6  ;;  %v978_v43 = vpop.permute.xlu1 %977 }
 0x324   :  { %2125 = vmatpush3.msra.mxu1 %v2391_v6  ;;  %v990_v54 = vsel %vm406_vm13, %v2544_v45, %v978_v43  ;;  %v1885_v45 = vsel %vm1277_vm8, 1.0, %v2316_v17 }
 0x325   :  { %2126 = vmatprep.subr.mxu1 %v2409_v9 }
 0x326   :  { %2127 = vmatpush3.msra.mxu1 %v2409_v9 }
 0x327   :  { %2129 = vmatmul.mubr.msk.f32.vlgmr.msra.gmra.mxu1 %vm211_vm3, %v1878_v42  ;;  %v976_v48 = vpop.permute.xlu1 %975  ;;  %2131 = vmatprep.subr.mxu1 %v2464_v32 }
 0x328   :  { %2132 = vmatpush3.msra.mxu1 %v2464_v32  ;;  %v989_v51 = vsel %vm406_vm13, %v2550_v46, %v976_v48 }
 0x329   :  { %2133 = vmatprep.subr.mxu1 %v2472_v33 }
 0x32a   :  { %2134 = vmatpush3.msra.mxu1 %v2472_v33  ;;  %v1172_v10 = vpop.permute.xlu0 %1171 }
 0x32b   :  { %v986_v50 = vpop.permute.xlu1 %985  ;;  %2135 = vmatprep.subr.mxu1 %v2479_v34  ;;  %v1184_v20 = vsel %vm406_vm13, %v2632_v18, %v1172_v10 }
 0x32c   :  { %2136 = vmatpush3.msra.mxu1 %v2479_v34  ;;  %v992_v57 = vsel %vm409_vm12, %v990_v54, %v986_v50 }
 0x32d   :  { %2137 = vmatprep.subr.mxu1 %v2486_v35 }
 0x32e   :  { %2138 = vmatpush3.msra.mxu1 %v2486_v35  ;;  %v1170_v12 = vpop.permute.xlu0 %1169 }
 0x32f   :  { %v984_v52 = vpop.permute.xlu1 %983  ;;  %2139 = vmatprep.subr.mxu1 %v2499_v36  ;;  %v1183_v13 = vsel %vm406_vm13, %v2634_v19, %v1170_v12 }
 0x330   :  { %v991_v55 = vsel %vm409_vm12, %v989_v51, %v984_v52  ;;  %2140 = vmatpush3.msra.mxu1 %v2499_v36 }
 0x331   :  { %2119 = vmatprep.mubr.msk.f32.mxu0 %vm412_vm14, %v991_v55  ;;  %2141 = vmatprep.subr.mxu1 %v2508_v37 }
 0x332   :  { %2120 = vmatmul.mubr.msk.f32.vlgmr.msra.gmra.mxu0 %vm412_vm14, %v992_v57  ;;  %2142 = vmatpush3.msra.mxu1 %v2508_v37  ;;  %v1900_v57 = vld [vmem:[%s2870_s6] ss:$0 sm:$0xff] }
 0x333   :  { %2147 = vmatpush3.msk.msra.mxu0 %vm218_vm0, %v2381_v4  ;;  %2152 = vmatprep.mubr.msk.f32.mxu0 %vm211_vm3, %v1884_v53 }
 0x334   :  { %2148 = vmatprep.subr.mxu0 %v2391_v6  ;;  %2170 = vmatprep.subr.msk.mxu1 %vm218_vm0, %v2381_v4 }
 0x335   :  { %2149 = vmatpush3.msra.mxu0 %v2391_v6 }
 0x336   :  { %2150 = vmatprep.subr.mxu0 %v2409_v9 }
 0x337   :  { %2151 = vmatpush3.msra.mxu0 %v2409_v9 }
 0x338   :  { %2153 = vmatmul.mubr.msk.f32.vlgmr.msra.gmra.mxu0 %vm211_vm3, %v1885_v45  ;;  %2155 = vmatprep.subr.mxu0 %v2464_v32 }
 0x339   :  { %2156 = vmatpush3.msra.mxu0 %v2464_v32 }
 0x33a   :  { %2157 = vmatprep.subr.mxu0 %v2472_v33 }
 0x33b   :  { %2158 = vmatpush3.msra.mxu0 %v2472_v33  ;;  %v1469_v22 = vpop.permute.xlu0 %1468 }
 0x33c   :  { %2159 = vmatprep.subr.mxu0 %v2479_v34  ;;  %v1466_v11 = vpop.permute.xlu1 %1465  ;;  %vm1471_vm10 = vcmp.eq.s32.totalorder %v2423_v14, %v1469_v22 }
 0x33d   :  { %2160 = vmatpush3.msra.mxu0 %v2479_v34  ;;  %vm1470_vm9 = vcmp.eq.s32.totalorder %v2423_v14, %v1466_v11  ;;  %v1892_v19 = vsel %vm1471_vm10, 1.0, %v2316_v17 }
 0x33e   :  { %2161 = vmatprep.subr.mxu0 %v2486_v35  ;;  %v1891_v26 = vsel %vm1470_vm9, 1.0, %v2316_v17 }
 0x33f   :  { %2162 = vmatpush3.msra.mxu0 %v2486_v35 }
 0x340   :  { %2163 = vmatprep.subr.mxu0 %v2499_v36 }
 0x341   :  { %2164 = vmatpush3.msra.mxu0 %v2499_v36 }
 0x342   :  { %2165 = vmatprep.subr.mxu0 %v2508_v37 }
 0x343   :  { %2166 = vmatpush3.msra.mxu0 %v2508_v37 }
 0x344   :  { %2194 = vmatprep.subr.mxu0 %v2464_v32 }
 0x3e1   :  { %v2097_v46 = vpop.f32.mrf.mxu1 }
 0x3e2   :  { %v2736_v58 = vmax.f32 %v687_v21, %v2097_v46 }
 0x3e3   :  { %v871_v59 = vpop.f32.mrf.mxu1 }
 0x3e4   :  { %v2741_v60 = vmax.f32 %v686_v23, %v871_v59 }
 0x3e7   :  { %v2743_v61 = vpop.f32.mrf.mxu1 }
 0x3e8   :  { %1365 = vrot.lane.b32.xlu0 %v2743_v61, %s2317_s5 }
 0x3e9   :  { %v2747_v62 = vpop.f32.mrf.mxu1 }
 0x3ea   :  { %1177 = vrot.lane.b32.xlu1 %v2747_v62, %s2319_s9 }
 0x3ee   :  { %1179 = vrot.lane.b32.xlu1 %v2743_v61, %s2319_s9 }
 0x3f2   :  { %1363 = vrot.lane.b32.xlu1 %v2747_v62, %s2317_s5  ;;  %v2755_v63 = vpop.f32.mrf.mxu0 }
 0x3f3   :  { %v1075_v0 = vmax.f32 %v2736_v58, %v2755_v63 }
 0x3f4   :  { %v2759_v2 = vpop.f32.mrf.mxu0 }
 0x3f5   :  { %v1074_v3 = vmax.f32 %v2741_v60, %v2759_v2 }
 0x3f8   :  { %v2763_v5 = vpop.f32.mrf.mxu0 }
 0x3f9   :  { %1373 = vrot.lane.b32.xlu0 %v2763_v5, %s2319_s9 }
 0x3fa   :  { %v2767_v7 = vpop.f32.mrf.mxu0 }
 0x3fb   :  { %1371 = vrot.lane.b32.xlu1 %v2767_v7, %s2319_s9 }
 0x3fd   :  { %1559 = vrot.lane.b32.xlu0 %v2763_v5, %s2317_s5 }
 0x3ff   :  { %1557 = vrot.lane.b32.xlu1 %v2767_v7, %s2317_s5 }
 0x45a   :  { %v1366_v14 = vpop.permute.xlu0 %1365 }
 0x45c   :  { %v1178_v15 = vpop.permute.xlu1 %1177 }
 0x45d   :  { %v1185_v16 = vsel %vm409_vm12, %v1183_v13, %v1178_v15 }
 0x45e   :  { %2143 = vmatprep.mubr.msk.f32.mxu1 %vm412_vm14, %v1185_v16 }
 0x460   :  { %v1180_v21 = vpop.permute.xlu1 %1179 }
 0x461   :  { %v1186_v23 = vsel %vm409_vm12, %v1184_v20, %v1180_v21 }
 0x462   :  { %2144 = vmatmul.mubr.msk.f32.vlgmr.msra.gmra.mxu1 %vm412_vm14, %v1186_v23 }
 0x463   :  { %2171 = vmatpush3.msk.msra.mxu1 %vm218_vm0, %v2381_v4  ;;  %2176 = vmatprep.mubr.msk.f32.mxu1 %vm211_vm3, %v1891_v26 }
 0x464   :  { %2172 = vmatprep.subr.mxu1 %v2391_v6  ;;  %v1364_v18 = vpop.permute.xlu1 %1363 }
 0x465   :  { %2173 = vmatpush3.msra.mxu1 %v2391_v6  ;;  %v1377_v6 = vsel %vm406_vm13, %v2658_v25, %v1364_v18 }
 0x466   :  { %2174 = vmatprep.subr.mxu1 %v2409_v9 }
 0x467   :  { %2175 = vmatpush3.msra.mxu1 %v2409_v9  ;;  %v1378_v9 = vsel %vm406_vm13, %v2652_v24, %v1366_v14 }
 0x468   :  { %2177 = vmatmul.mubr.msk.f32.vlgmr.msra.gmra.mxu1 %vm211_vm3, %v1892_v19  ;;  %2179 = vmatprep.subr.mxu1 %v2464_v32 }
 0x469   :  { %2180 = vmatpush3.msra.mxu1 %v2464_v32 }
 0x46a   :  { %2181 = vmatprep.subr.mxu1 %v2472_v33 }
 0x46b   :  { %2182 = vmatpush3.msra.mxu1 %v2472_v33  ;;  %v1374_v4 = vpop.permute.xlu0 %1373 }
 0x46c   :  { %2183 = vmatprep.subr.mxu1 %v2479_v34  ;;  %v1380_v28 = vsel %vm409_vm12, %v1378_v9, %v1374_v4 }
 0x46d   :  { %v1372_v17 = vpop.permute.xlu1 %1371  ;;  %2184 = vmatpush3.msra.mxu1 %v2479_v34 }
 0x46e   :  { %v1379_v27 = vsel %vm409_vm12, %v1377_v6, %v1372_v17  ;;  %2185 = vmatprep.subr.mxu1 %v2486_v35 }
 0x46f   :  { %2167 = vmatprep.mubr.msk.f32.mxu0 %vm412_vm14, %v1379_v27  ;;  %2186 = vmatpush3.msra.mxu1 %v2486_v35 }
 0x470   :  { %2168 = vmatmul.mubr.msk.f32.vlgmr.msra.gmra.mxu0 %vm412_vm14, %v1380_v28  ;;  %2187 = vmatprep.subr.mxu1 %v2499_v36 }
 0x471   :  { %2195 = vmatpush3.msra.mxu0 %v2464_v32  ;;  %2188 = vmatpush3.msra.mxu1 %v2499_v36 }
 0x472   :  { %2196 = vmatprep.subr.mxu0 %v2472_v33  ;;  %2189 = vmatprep.subr.mxu1 %v2508_v37 }
 0x473   :  { %2197 = vmatpush3.msra.mxu0 %v2472_v33  ;;  %2190 = vmatpush3.msra.mxu1 %v2508_v37 }
 0x474   :  { %2198 = vmatprep.subr.mxu0 %v2479_v34 }
 0x475   :  { %2199 = vmatpush3.msra.mxu0 %v2479_v34 }
 0x476   :  { %2200 = vmatprep.subr.mxu0 %v2486_v35 }
 0x477   :  { %2201 = vmatpush3.msra.mxu0 %v2486_v35 }
 0x478   :  { %2202 = vmatprep.subr.mxu0 %v2499_v36 }
 0x479   :  { %2203 = vmatpush3.msra.mxu0 %v2499_v36  ;;  %v1560_v36 = vpop.permute.xlu0 %1559 }
 0x47a   :  { %2204 = vmatprep.subr.mxu0 %v2508_v37  ;;  %v1572_v39 = vsel %vm406_vm13, %v2743_v61, %v1560_v36 }
 0x47b   :  { %2205 = vmatpush3.msra.mxu0 %v2508_v37  ;;  %v1558_v37 = vpop.permute.xlu1 %1557 }
 0x47c   :  { %v1571_v30 = vsel %vm406_vm13, %v2747_v62, %v1558_v37 }
 0x522   :  { %v2145_v32 = vpop.f32.mrf.mxu1 }
 0x523   :  { %v1269_v33 = vmax.f32 %v1075_v0, %v2145_v32 }
 0x524   :  { %v1259_v24 = vpop.f32.mrf.mxu1 }
 0x525   :  { %v1268_v34 = vmax.f32 %v1074_v3, %v1259_v24 }
 0x528   :  { %v2178_v25 = vpop.f32.mrf.mxu1 }
 0x529   :  { %1567 = vrot.lane.b32.xlu0 %v2178_v25, %s2319_s9 }
 0x52a   :  { %v1548_v35 = vpop.f32.mrf.mxu1 }
 0x52b   :  { %1565 = vrot.lane.b32.xlu1 %v1548_v35, %s2319_s9 }
 0x52d   :  { %1660 = vrot.lane.b32.xlu0 %v2178_v25, %s2317_s5 }
 0x52f   :  { %1658 = vrot.lane.b32.xlu1 %v1548_v35, %s2317_s5 }
 0x530   :  { %v2169_v49 = vpop.f32.mrf.mxu0 }
 0x531   :  { %v1463_v52 = vmax.f32 %v1269_v33, %v2169_v49 }
 0x532   :  { %v1453_v51 = vpop.f32.mrf.mxu0 }
 0x533   :  { %v1462_v54 = vmax.f32 %v1268_v34, %v1453_v51 }
 0x59b   :  { %v1568_v29 = vpop.permute.xlu0 %1567 }
 0x59c   :  { %v1574_v44 = vsel %vm409_vm12, %v1572_v39, %v1568_v29 }
 0x59d   :  { %v1566_v31 = vpop.permute.xlu1 %1565 }
 0x59e   :  { %v1573_v41 = vsel %vm409_vm12, %v1571_v30, %v1566_v31 }
 0x59f   :  { %2191 = vmatprep.mubr.msk.f32.mxu1 %vm412_vm14, %v1573_v41  ;;  %v1661_v8 = vpop.permute.xlu0 %1660 }
 0x5a0   :  { %2192 = vmatmul.mubr.msk.f32.vlgmr.msra.gmra.mxu1 %vm412_vm14, %v1574_v44  ;;  %v1665_v1 = vsel %vm406_vm13, %v2763_v5, %v1661_v8 }
 0x5a1   :  { %v1659_v47 = vpop.permute.xlu1 %1658  ;;  %v1667_v48 = vsel %vm409_vm12, %v1665_v1, 0.0 }
 0x5a2   :  { %v1664_v43 = vsel %vm406_vm13, %v2767_v7, %v1659_v47 }
 0x5a3   :  { %v1666_v42 = vsel %vm409_vm12, %v1664_v43, 0.0 }
 0x5a4   :  { %2206 = vmatprep.mubr.msk.f32.mxu0 %vm412_vm14, %v1666_v42 }
 0x5a5   :  { %2207 = vmatmul.mubr.msk.f32.vlgmr.msra.gmra.mxu0 %vm412_vm14, %v1667_v48 }
 0x660   :  { %v2193_v50 = vpop.f32.mrf.mxu1 }
 0x661   :  { %v1657_v55 = vmax.f32 %v1463_v52, %v2193_v50 }
 0x662   :  { %v1647_v53 = vpop.f32.mrf.mxu1 }
 0x663   :  { %v1656_v45 = vmax.f32 %v1462_v54, %v1647_v53 }
 0x665   :  { %v2208_v56 = vpop.f32.mrf.mxu0 }
 0x666   :  { %v1750_v46 = vmax.f32 %v1657_v55, %v2208_v56 }
 0x667   :  { %v1740_v58 = vpop.f32.mrf.mxu0 }
 0x668   :  { %v1759_v59 = vadd.f32 %v1900_v57, %v1750_v46  ;;  %v1749_v60 = vmax.f32 %v1656_v45, %v1740_v58 }
 0x66a   :  { %v1758_v61 = vadd.f32 %v1900_v57, %v1749_v60 }
 0x66b LB: > { %2298 = dma.done.wait [#allocation3], 16  ;;  %s2308_s12 = sphi %s2306_s12, %s1765_s12  }
 0x66c   : > { %2299 = vsyncadd [#allocation3], 4294967280  ;;  %s1765_s12 = sadd.s32 1, %s2308_s12  }
 0x66d   : > { %p1762_p6 = scmp.ge.s32.totalorder %s1765_s12, 16  }
 0x66e   :  { %1773 = vrot.lane.b32.xlu0 (%p1762_p6), %v2525_v40, %s2319_s9  ;;  %s2323_s6 = smov (%p1762_p6), 40   ;;  %v1769_v62 = vld [vmem:[#allocation2] sm:$0xff] (%p1762_p6)  ;;  %vm1789_vm0 = vcmask (%p1762_p6), 326656   ;;  %vm1792_vm3 = vcmask (%p1762_p6), 457728   ;;  %v1770_v5 = vld [vmem:[#allocation2 + $0x8] sm:$0xff] (%p1762_p6)  ;;  %s2324_s13 = smov (%p1762_p6), [#allocation6]  }
 0x66f   :  { %1764 = sbr.rel (!%p1762_p6) target bundleno = 1643 (0x66b), region = 107  ;;  %1781 = vrot.lane.b32.xlu1 (%p1762_p6), %v1758_v61, %s2323_s6  ;;  %s1800_s14 = sshll.u32 (%p1762_p6), %s2324_s13, 4  ;;  %s1801_s14 = int_to_ptr.vmem [resolvable:$true] %s1800_s14 }
 0x670   :  { %s2268_s15 = scalar_lea.vmem (%p1762_p6), %s1801_s14, 256  ;;  %p2273_p8 = scmp.lt.s32.totalorder (%p1762_p6), %s1801_s14, %s1801_s14 }
 0x671   :  { %p2269_p7 = scmp.ne.s32.totalorder (%p1762_p6), %s1801_s14, %s2268_s15  ;;  %p2274_p9 = scmp.lt.s32.totalorder (%p1762_p6), %s2268_s15, %s2268_s15 }
 0x672   :  { %1775 = vrot.lane.b32.xlu0 (%p1762_p6), %v2515_v38, %s2319_s9 }
 0x673   :  { %1783 = vrot.lane.b32.xlu1 (%p1762_p6), %v1759_v59, %s2323_s6  ;;  %p2275_p10 = por (%p1762_p6), %p2274_p9, %p2273_p8 }
 0x675   :  { %p2276_p11 = pnand %p2275_p10, %p2269_p7 }
 0x6e0   :  { %v1774_v63 = vpop.permute.xlu0 %1773 }
 0x6e1   :  { %v1787_v0 = vsel %vm409_vm12, %v1769_v62, %v1774_v63  ;;  %v1782_v2 = vpop.permute.xlu1 %1781 }
 0x6e2   :  { %v1790_v3 = vsel %vm1789_vm0, %v1787_v0, %v1782_v2 }
 0x6e3   :  { %1793 = vst.msk [vmem:[#allocation6] sm:$0xff] %vm1792_vm3, %v1790_v3 }
 0x6e4   :  { %v1776_v7 = vpop.permute.xlu0 %1775 }
 0x6e5   :  { %v1788_v40 = vsel %vm409_vm12, %v1770_v5, %v1776_v7  ;;  %v1784_v10 = vpop.permute.xlu1 %1783 }
 0x6e6   :  { %v1791_v11 = vsel %vm1789_vm0, %v1788_v40, %v1784_v10 }
 0x6e7   :  { %1794 = vst.msk [vmem:[#allocation6 + $0x8] sm:$0xff] %vm1792_vm3, %v1791_v11 }
 0x6e8   :  { %2279 = shalt.err (!%p2276_p11)
}
 0x6e9   :  { %s2325_s16 = smov 128   ;;  %s2326_s2 = smov 8  }
 0x6ea   :  { %1806 = dma.vmem_to_hbm [thread:$0]  %s1801_s14, 256, %s2871_s7, [#allocation7], %s2325_s16, %s2325_s16, %s2326_s2  }
 0x6eb   :  { %2300 = dma.done.wait [#allocation7], 256  }
 0x6ec   :  { %2301 = vsyncadd [#allocation7], 4294967040 }
 0x6ed   :  { %1810 = vsyncpa [#allocation7], 1 }
 0x6ee   :  { %1811 = vsyncmov [#allocation3] }
 0x6f1   :  { %s1812_s19 = vpop.sfrf %1811 }
 0x6f2   :  { %p1901_p12 = scmp.ne.s32.totalorder %s1812_s19, 0 }
 0x6f4   :  { %1816 = shalt.err (%p1901_p12)  }

</bundles_post_ra>
